<compile_context>
chip_gen: v5e
topology: v5e:2x2
jax: 0.10.0
libtpu: 0.0.40
codegen_flags: <defaults>
</compile_context>

<pallas_src>
import functools

import numpy as np
import jax
import jax.numpy as jnp
from jax import lax
from jax.experimental import pallas as pl
from jax.experimental.pallas import tpu as pltpu

K0, P0 = 5, 2          # conv0: depthwise 5x5x5, padding 2
K1, P1, DIL = 7, 9, 3  # conv_spatial: depthwise 7x7x7, padding 9, dilation 3

_HIGHEST = jax.lax.Precision.HIGHEST


# --------------------------------------------------------------------------
# One-time probe of pltpu.roll's shift direction on the sublane axis.
# --------------------------------------------------------------------------
_ROLL_CONVENTION = None


def _roll_convention():
    """True iff pltpu.roll on the sublane axis matches np.roll semantics.

    Eager one-time probe (cached) so the depth shift stays correct no matter
    which rotation convention the installed JAX/Mosaic uses.  Runs outside
    jit; the compute path below is fully jittable.
    """
    global _ROLL_CONVENTION
    if _ROLL_CONVENTION is None:
        def probe(x_ref, sub_ref):
            sub_ref[...] = pltpu.roll(x_ref[...], 1, 0)

        x = (lax.broadcasted_iota(jnp.int32, (8, 128), 1)
             + 1000 * lax.broadcasted_iota(jnp.int32, (8, 128), 0))
        sub = pl.pallas_call(
            probe, out_shape=jax.ShapeDtypeStruct((8, 128), jnp.int32))(x)
        _ROLL_CONVENTION = int(sub[1, 0]) == int(x[0, 0])
    return _ROLL_CONVENTION


# --------------------------------------------------------------------------
# Static (shape-only) packing plans, cached per shape.
# --------------------------------------------------------------------------
@functools.lru_cache(maxsize=None)
def _band_plan(K, dil, pad, C, D, H, W):
    """Scatter plan for the per-depth-offset banded depthwise-conv matrices.

    Returns (od_list, per_od) where per_od[i] = (f_in, f_out, c, kd, kh, kw)
    int32 numpy arrays such that M_od[f_in, f_out] = w[c, kd, kh, kw], with
    the H/W zero padding already folded in (out-of-range taps dropped).
    Lane layout: f = (h*W + w)*C + c.
    """
    groups = {}
    for kd in range(K):
        od = kd * dil - pad
        if not -D < od < D:
            continue
        for kh in range(K):
            oh = kh * dil - pad
            if not -H < oh < H:
                continue
            for kw in range(K):
                ow = kw * dil - pad
                if not -W < ow < W:
                    continue
                ent = groups.setdefault(od, ([], [], [], [], [], []))
                for h in range(H):
                    hi = h + oh
                    if not 0 <= hi < H:
                        continue
                    for w in range(W):
                        wi = w + ow
                        if not 0 <= wi < W:
                            continue
                        for c in range(C):
                            ent[0].append((hi * W + wi) * C + c)   # f_in
                            ent[1].append((h * W + w) * C + c)     # f_out
                            ent[2].append(c)
                            ent[3].append(kd)
                            ent[4].append(kh)
                            ent[5].append(kw)
    od_list = tuple(sorted(groups))
    per_od = tuple(tuple(np.asarray(a, np.int32) for a in groups[od])
                   for od in od_list)
    return od_list, per_od


def _pack_banded(w, per_od, HWC):
    """(nOD, HWC, HWC) banded matrices from depthwise weights (traceable)."""
    mats = []
    for f_in, f_out, c, kd, kh, kw in per_od:
        vals = w[c, kd, kh, kw]                                   # gather
        mats.append(jnp.zeros((HWC, HWC), jnp.float32).at[f_in, f_out].set(vals))
    return jnp.stack(mats, 0)


def _depth_masks(od_list, NB, D, HWC):
    """(nOD, NB*D, HWC) f32 depth-validity masks (pre-broadcast, full vregs)."""
    d = np.arange(NB * D) % D
    m = np.stack([((d + od >= 0) & (d + od < D)).astype(np.float32)
                  for od in od_list])
    return np.ascontiguousarray(
        np.broadcast_to(m[:, :, None], (len(od_list), NB * D, HWC)))


# --------------------------------------------------------------------------
# Kernel factory (all shape/offset info static, loops fully unrolled)
# --------------------------------------------------------------------------
def _make_kernel(NBD, HWC, od0, od1, sub_like_np):
    def shift_d(v, od):
        # result[r, :] = v[(r + od) % NBD, :]; invalid rows masked by caller.
        shift = ((-od) if sub_like_np else od) % NBD
        return pltpu.roll(v, shift, 0)

    def banded_conv(v, m_ref, dm_ref, od_list, b_ref):
        acc = jnp.broadcast_to(b_ref[...], (NBD, HWC)).astype(jnp.float32)
        for i, od in enumerate(od_list):            # fully unrolled (~5 taps)
            vd = v if od == 0 else shift_d(v, od) * dm_ref[i]
            acc = acc + jnp.dot(vd, m_ref[i],
                                preferred_element_type=jnp.float32,
                                precision=_HIGHEST)
        return acc

    def kernel(x_ref, m0_ref, m1_ref, dm0_ref, dm1_ref, b0_ref, bc_ref, o_ref):
        x = x_ref[0]                                          # (NBD, HWC)
        a = banded_conv(x, m0_ref, dm0_ref, od0, b0_ref)      # conv0 (5^3, p=2)
        attn = banded_conv(a, m1_ref, dm1_ref, od1, bc_ref)   # conv_spatial∘conv1
        o_ref[0] = x * attn                                   # gating, 1 store

    return kernel


# --------------------------------------------------------------------------
# Wrapper: thin Python shim + per-shape cached jitted forward
# --------------------------------------------------------------------------
_FWD_CACHE = {}


def lka3d_pallas(x_ncdhw, w0, b0, w1, b1, w2, b2):
    """LKA3d forward.  x_ncdhw: (N, C, D, H, W) float32.

    Call this wrapper directly (don't wrap it in jax.jit): it runs the cached
    roll probe once, then dispatches to a per-shape cached jitted path that
    fuses weight packing, layout transposes and the pallas_call.
    """
    sub_like_np = _roll_convention()
    key = (tuple(x_ncdhw.shape), bool(sub_like_np))
    fwd = _FWD_CACHE.get(key)
    if fwd is None:
        fwd = _build_forward(tuple(x_ncdhw.shape), sub_like_np)
        _FWD_CACHE[key] = fwd
    return fwd(x_ncdhw, w0, b0, w1, b1, w2, b2)


def _build_forward(shape, sub_like_np):
    N, C, D, H, W = shape
    HWC = H * W * C
    HW = H * W

    # Batch blocking: <=2 grid steps so both v7x TensorCores get work while
    # single-TC v5e/v6e pay at most 2 steps of pipeline overhead.
    G = 2 if N >= 2 else 1
    NB = -(-N // G)
    N_pad = G * NB
    NBD = NB * D

    od0, per_od0 = _band_plan(K0, 1, P0, C, D, H, W)
    od1, per_od1 = _band_plan(K1, DIL, P1, C, D, H, W)
    dm0 = jnp.asarray(_depth_masks(od0, NB, D, HWC))
    dm1 = jnp.asarray(_depth_masks(od1, NB, D, HWC))

    kernel = _make_kernel(NBD, HWC, od0, od1, sub_like_np)

    call = pl.pallas_call(
        kernel,
        out_shape=jax.ShapeDtypeStruct((G, NBD, HWC), jnp.float32),
        grid_spec=pltpu.PrefetchScalarGridSpec(
            num_scalar_prefetch=0,
            grid=(G,),
            in_specs=[
                pl.BlockSpec((1, NBD, HWC), lambda g: (g, 0, 0)),         # x slab
                pl.BlockSpec((len(od0), HWC, HWC), lambda g: (0, 0, 0)),  # M0
                pl.BlockSpec((len(od1), HWC, HWC), lambda g: (0, 0, 0)),  # M1·P
                pl.BlockSpec((len(od0), NBD, HWC), lambda g: (0, 0, 0)),  # d-mask0
                pl.BlockSpec((len(od1), NBD, HWC), lambda g: (0, 0, 0)),  # d-mask1
                pl.BlockSpec((1, HWC), lambda g: (0, 0)),                 # bias0
                pl.BlockSpec((1, HWC), lambda g: (0, 0)),                 # fused bias
            ],
            out_specs=pl.BlockSpec((1, NBD, HWC), lambda g: (g, 0, 0)),
        ),
        compiler_params=pltpu.CompilerParams(
            dimension_semantics=("parallel",),        # batch split on v7x's 2 TCs
            vmem_limit_bytes=32 * 1024 * 1024,        # explicit budget (v7x-safe)
        ),
    )

    @jax.jit
    def fwd(x, w0, b0, w1, b1, w2, b2):
        f32 = jnp.float32
        # -- pack weights (traced, cheap).  TODO(synk): hoist/cache the packed
        #    matrices across calls when the module parameters are static.
        m0 = _pack_banded(w0.astype(f32), per_od0, HWC)
        m1 = _pack_banded(w1.astype(f32), per_od1, HWC)
        pw = jnp.kron(jnp.eye(HW, dtype=f32), w2.astype(f32).T)   # block-diag 1x1x1
        m1p = jnp.matmul(m1, pw, precision=_HIGHEST)              # compose conv1
        b0row = jnp.tile(b0.astype(f32), HW)[None, :]
        bc = b2.astype(f32) + jnp.matmul(w2.astype(f32), b1.astype(f32),
                                         precision=_HIGHEST)
        bcrow = jnp.tile(bc, HW)[None, :]

        # -- NCDHW -> lane-dense (G, NB*D, H*W*C) slab (fused inside this jit)
        xs = jnp.transpose(x.astype(f32), (0, 2, 3, 4, 1)).reshape(N, D, HWC)
        if N_pad != N:
            xs = jnp.concatenate(
                [xs, jnp.zeros((N_pad - N, D, HWC), f32)], axis=0)
        xs = xs.reshape(G, NBD, HWC)

        out = call(xs, m0, m1p, dm0, dm1, b0row, bcrow)

        out = out.reshape(N_pad, D, H, W, C)[:N]
        return jnp.transpose(out, (0, 4, 1, 2, 3))                # back to NCDHW

    return fwd


# --------------------------------------------------------------------------
# Pure-JAX reference (mirrors the PyTorch module)
# --------------------------------------------------------------------------
def lka3d_ref(x, w0, b0, w1, b1, w2, b2):
    C = x.shape[1]
    dn = lax.conv_dimension_numbers(
        x.shape, (C, 1, K0, K0, K0), ('NCDHW', 'OIDHW', 'NCDHW'))
    y = lax.conv_general_dilated(
        x, w0[:, None], (1, 1, 1), [(P0, P0)] * 3,
        dimension_numbers=dn, feature_group_count=C, precision=_HIGHEST)
    y = y + b0[None, :, None, None, None]
    y = lax.conv_general_dilated(
        y, w1[:, None], (1, 1, 1), [(P1, P1)] * 3,
        rhs_dilation=(DIL, DIL, DIL),
        dimension_numbers=dn, feature_group_count=C, precision=_HIGHEST)
    y = y + b1[None, :, None, None, None]
    y = jnp.einsum('ncdhw,oc->nodhw', y, w2, precision=_HIGHEST)
    y = y + b2[None, :, None, None, None]
    return x * y


if __name__ == "__main__":
    N, C, D, H, W = 2, 4, 8, 8, 8

    key = jax.random.PRNGKey(0)
    ks = jax.random.split(key, 7)
    # deterministic synthetic parameters (shapes from LKA3d.__init__, groups=dim)
    w0 = 0.05 * jax.random.normal(ks[0], (C, K0, K0, K0), jnp.float32)  # conv0 (dw)
    b0 = 0.05 * jax.random.normal(ks[1], (C,), jnp.float32)
    w1 = 0.05 * jax.random.normal(ks[2], (C, K1, K1, K1), jnp.float32)  # conv_spatial (dw)
    b1 = 0.05 * jax.random.normal(ks[3], (C,), jnp.float32)
    w2 = 0.20 * jax.random.normal(ks[4], (C, C), jnp.float32)           # conv1 1x1x1
    b2 = 0.05 * jax.random.normal(ks[5], (C,), jnp.float32)
    x = jax.random.normal(ks[6], (N, C, D, H, W), jnp.float32)

    out = lka3d_pallas(x, w0, b0, w1, b1, w2, b2)
    out = jax.block_until_ready(out)

    ref = lka3d_ref(x, w0, b0, w1, b1, w2, b2)
    np.testing.assert_allclose(np.asarray(out), np.asarray(ref),
                               rtol=2e-4, atol=2e-4)
    print("KERNEL_OK")
</pallas_src>

<mosaic_0001>
module attributes {stable_mosaic.version = 11 : i64} {
  func.func @probe(%arg0: memref<8x128xi32, #tpu.memory_space<vmem>>, %arg1: memref<8x128xi32, #tpu.memory_space<vmem>>) attributes {dimension_semantics = [], scalar_prefetch = 0 : i64, scratch_operands = 0 : i64, tpu.core_type = #tpu.core_type<tc>} {
    %c0 = arith.constant 0 : index
    %c0_0 = arith.constant 0 : index
    %0 = vector.load %arg0[%c0, %c0_0] : memref<8x128xi32, #tpu.memory_space<vmem>>, vector<8x128xi32>
    %c1_i32 = arith.constant 1 : i32
    %1 = tpu.dynamic_rotate %0 by %c1_i32 dim 0 : vector<8x128xi32>, i32 -> vector<8x128xi32>
    %c0_1 = arith.constant 0 : index
    %c0_2 = arith.constant 0 : index
    %2 = vector.load %arg1[%c0_1, %c0_2] : memref<8x128xi32, #tpu.memory_space<vmem>>, vector<8x128xi32>
    tpu.vector_store %arg1[%c0_1, %c0_2], %1 {strides = array<i32>} : memref<8x128xi32, #tpu.memory_space<vmem>>, vector<8x128xi32>,
    return
  }
}

</mosaic_0001>

<bundles_post_ra>
// kernel: tpu_custom_call.1
= control target key start
LH: loop header
LB: loop body
LE: loop exit
PB: predicated region body
PF: predicated region fallthrough
CT: control target
= control target key end

     0   :  { %6 = vsyncpa [#allocation3], 0  ;;  %s115_s0 = inlined_call_operand.hbm [shape: s32[8,128], index: 0, kind: input, shape index: {}]   ;;  %s116_s1 = inlined_call_operand.hbm [shape: s32[8,128], index: 1, kind: output, shape index: {}]  }
   0x1   :  { %7 = vsyncpa [#allocation4], 0  ;;  %s13_s8 = sshll.u32 %s115_s0, 4  ;;  %s97_s9 = smov [#allocation2]   ;;  %s14_s8 = int_to_ptr.hbm [resolvable:$true] %s13_s8 }
   0x2   :  { %s15_s10 = sshll.u32 %s97_s9, 4  ;;  %s16_s10 = int_to_ptr.vmem [resolvable:$true] %s15_s10 }
   0x3   :  { %18 = dma.hbm_to_vmem [thread:$0]  %s14_s8, 128, %s16_s10, [#allocation3]  }
   0x4   :  { %93 = dma.done.wait [#allocation3], 128  }
   0x5   :  { %94 = vsyncadd [#allocation3], 4294967168  ;;  %s98_s11 = smov [#allocation5]   ;;  %s33_s15 = sshll.u32 %s116_s1, 4  ;;  %v23_v0 = vld [vmem:[#allocation2] sm:$0xff]  ;;  %s34_s15 = int_to_ptr.hbm [resolvable:$true] %s33_s15 }
   0x6   :  { %s31_s12 = sshll.u32 %s98_s11, 4  ;;  %v24_v1 = vrot.slane %v23_v0, 7  ;;  %s32_s12 = int_to_ptr.vmem [resolvable:$true] %s31_s12 }
   0x8   :  { %25 = vst [vmem:[#allocation5] sm:$0xff] %v24_v1 }
   0x9   :  { %36 = dma.vmem_to_hbm [thread:$0]  %s32_s12, 128, %s34_s15, [#allocation4]  }
   0xa   :  { %95 = dma.done.wait [#allocation4], 128  }
   0xb   :  { %96 = vsyncadd [#allocation4], 4294967168 }
   0xc   :  { %41 = vsyncpa [#allocation3], 1 }
   0xd   :  { %42 = vsyncpa [#allocation4], 1 }

</bundles_post_ra>
